<compile_context>
chip_gen: v5e
topology: v5e:2x2
jax: 0.10.0
libtpu: 0.0.40
codegen_flags: <defaults>
</compile_context>

<pallas_src>
import jax
import jax.numpy as jnp
from jax.experimental import pallas as pl
from jax.experimental.pallas import tpu as pltpu


def transition_kernel(x_ref, scale_ref, shift_ref, w_ref, o_ref, acc_ref):
    # x_ref:     (1, 4, TM, TC)  4 = the 2x2 pool-window positions,
    #                            TM pooled-pixel rows, TC channel slice
    # scale_ref: (1, TC)         folded BN scale  = gamma / sqrt(var + eps)
    # shift_ref: (1, TC)         folded BN shift  = beta - mean * scale
    # w_ref:     (TC, OP)        bf16 1x1-conv weight slice (O padded to 128-mult)
    # o_ref:     (1, TM, OP)     output block (lane-dense)
    # acc_ref:   (TM, OP) f32    accumulator over the channel (k) grid axis
    k = pl.program_id(2)

    @pl.when(k == 0)
    def _():
        acc_ref[...] = jnp.zeros_like(acc_ref)

    s = scale_ref[...]                     # (1, TC)
    b = shift_ref[...]                     # (1, TC)

    # BN + ReLU + 2x2 average pool.  ReLU is elementwise, so it is applied to
    # each window position independently and the four results summed (VPU).
    p = jnp.maximum(x_ref[0, 0] * s + b, 0.0)
    for i in range(1, 4):
        p = p + jnp.maximum(x_ref[0, i] * s + b, 0.0)
    p = p * 0.25                           # (TM, TC), f32

    # 1x1 conv on the pooled (quarter-size) tensor: bf16 MXU, f32 accumulate.
    acc_ref[...] += jnp.dot(p.astype(jnp.bfloat16), w_ref[...],
                            preferred_element_type=jnp.float32)

    @pl.when(k == pl.num_programs(2) - 1)
    def _():
        o_ref[0] = acc_ref[...].astype(o_ref.dtype)


def _pick_spatial_tile(total, target=512):
    """Largest multiple-of-8 divisor of `total` that is <= target (else total)."""
    if total <= target:
        return total
    start = target - (target % 8)
    for t in range(start, 7, -8):
        if total % t == 0:
            return t
    return total


def _pick_channel_tile(c):
    """K-tile for the conv contraction (256 on big C, else full C)."""
    if c <= 256:
        return c
    if c % 256 == 0:
        return 256
    if c % 128 == 0:
        return 128
    return c


def transition_layer(x_nchw, gamma, beta, running_mean, running_var, conv_w,
                     eps=1e-5):
    """x_nchw: (N, C, H, W) float32.  conv_w: (O, C) 1x1-conv weight.
    Returns (N, O, H//2, W//2) float32 (same axis convention as PyTorch)."""
    N, C, H, W = x_nchw.shape
    O = conv_w.shape[0]
    # TODO(synk): odd H/W (PyTorch AvgPool2d floors) not handled.
    assert H % 2 == 0 and W % 2 == 0
    Ho, Wo = H // 2, W // 2
    HWo = Ho * Wo

    TM = _pick_spatial_tile(HWo)           # pooled-pixel rows per grid step
    TC = _pick_channel_tile(C)             # channel (K) slice per grid step
    OP = ((O + 127) // 128) * 128          # lane-dense padded output channels

    # NCHW -> (N, 4, Ho*Wo, C): expose the 2x2 pool window as a tiny leading
    # axis so in-kernel pooling is 4 full-tile adds.  One XLA transpose/copy.
    # TODO(synk): this single HBM transpose could be removed with an NCHW
    #             in-kernel layout or allow_input_fusion.
    x6 = x_nchw.reshape(N, C, Ho, 2, Wo, 2)
    x_k = jnp.transpose(x6, (0, 3, 5, 2, 4, 1)).reshape(N, 4, HWo, C)
    x_k = x_k.astype(jnp.float32)

    inv_std = 1.0 / jnp.sqrt(running_var + eps)
    scale = (gamma * inv_std).reshape(1, C).astype(jnp.float32)
    shift = (beta - running_mean * gamma * inv_std).reshape(1, C).astype(jnp.float32)

    w = conv_w.reshape(O, C).T.astype(jnp.float32)        # (C, O)
    if OP != O:
        w = jnp.pad(w, ((0, 0), (0, OP - O)))
    w = w.astype(jnp.bfloat16)                            # bf16 MXU operand

    grid = (N, HWo // TM, C // TC)

    out_flat = pl.pallas_call(
        transition_kernel,
        out_shape=jax.ShapeDtypeStruct((N, HWo, OP), jnp.float32),
        grid_spec=pltpu.PrefetchScalarGridSpec(
            num_scalar_prefetch=0,
            grid=grid,
            in_specs=[
                pl.BlockSpec((1, 4, TM, TC), lambda n, m, k: (n, 0, m, k)),
                pl.BlockSpec((1, TC), lambda n, m, k: (0, k)),
                pl.BlockSpec((1, TC), lambda n, m, k: (0, k)),
                pl.BlockSpec((TC, OP), lambda n, m, k: (k, 0)),
            ],
            out_specs=pl.BlockSpec((1, TM, OP), lambda n, m, k: (n, m, 0)),
            scratch_shapes=[pltpu.VMEM((TM, OP), jnp.float32)],
        ),
        compiler_params=pltpu.CompilerParams(
            dimension_semantics=("parallel", "parallel", "arbitrary")),
    )(x_k, scale, shift, w)

    # (N, Ho*Wo, OP) -> drop pad -> (N, Ho, Wo, O) -> NCHW
    out = out_flat[:, :, :O].reshape(N, Ho, Wo, O)
    return jnp.transpose(out, (0, 3, 1, 2))


def transition_layer_ref(x_nchw, gamma, beta, running_mean, running_var,
                         conv_w, eps=1e-5):
    """Pure-JAX f32 reference (same math, no Pallas)."""
    N, C, H, W = x_nchw.shape
    inv_std = 1.0 / jnp.sqrt(running_var + eps)
    xn = (x_nchw - running_mean[None, :, None, None]) * inv_std[None, :, None, None]
    xn = xn * gamma[None, :, None, None] + beta[None, :, None, None]
    xr = jnp.maximum(xn, 0.0)
    z = jnp.einsum("nchw,oc->nohw", xr, conv_w)                   # 1x1 conv
    O = conv_w.shape[0]
    z = z.reshape(N, O, H // 2, 2, W // 2, 2)
    return z.mean(axis=(3, 5))                                    # avg pool 2x2


if __name__ == "__main__":
    key = jax.random.PRNGKey(0)
    N, INC, H, W = 2, 4, 16, 16
    THETA = 0.5
    OUTC = int(THETA * INC)

    k_x, k_w = jax.random.split(key)
    x = jax.random.normal(k_x, (N, INC, H, W), dtype=jnp.float32)

    # Deterministic parameter initialization (shapes from the module __init__).
    gamma = 1.0 + 0.1 * jnp.arange(INC, dtype=jnp.float32)         # BN weight
    beta = 0.05 * jnp.arange(INC, dtype=jnp.float32)               # BN bias
    running_mean = 0.02 * jnp.arange(INC, dtype=jnp.float32)
    running_var = 1.0 + 0.03 * jnp.arange(INC, dtype=jnp.float32)
    conv_w = jax.random.normal(k_w, (OUTC, INC), dtype=jnp.float32)  # (O, C)

    out = transition_layer(x, gamma, beta, running_mean, running_var, conv_w)
    out = jax.block_until_ready(out)

    ref = transition_layer_ref(x, gamma, beta, running_mean, running_var, conv_w)
    assert out.shape == (N, OUTC, H // 2, W // 2), out.shape
    max_err = float(jnp.max(jnp.abs(out - ref)))
    # bf16 MXU operands -> compare to the f32 reference at bf16-level tolerance.
    assert jnp.allclose(out, ref, rtol=5e-2, atol=1e-1), max_err

    print("KERNEL_OK")
</pallas_src>

<mosaic_0001>
module attributes {stable_mosaic.version = 11 : i64} {
  func.func @transition_kernel(%arg0: i32, %arg1: i32, %arg2: i32, %arg3: memref<1x4x64x4xf32, #tpu.memory_space<vmem>>, %arg4: memref<1x4xf32, #tpu.memory_space<vmem>>, %arg5: memref<1x4xf32, #tpu.memory_space<vmem>>, %arg6: memref<4x128xbf16, #tpu.memory_space<vmem>>, %arg7: memref<1x64x128xf32, #tpu.memory_space<vmem>>, %arg8: memref<64x128xf32, #tpu.memory_space<vmem>>) attributes {dimension_semantics = [#tpu.dimension_semantics<parallel>, #tpu.dimension_semantics<parallel>, #tpu.dimension_semantics<arbitrary>], iteration_bounds = array<i64: 2, 1, 1>, scalar_prefetch = 0 : i64, scratch_operands = 1 : i64, tpu.core_type = #tpu.core_type<tc>, window_params = [{transform_indices = @transform_0, window_bounds = array<i64: 1, 4, 64, 4>}, {transform_indices = @transform_1, window_bounds = array<i64: 1, 4>}, {transform_indices = @transform_2, window_bounds = array<i64: 1, 4>}, {transform_indices = @transform_3, window_bounds = array<i64: 4, 128>}, {transform_indices = @transform_4, window_bounds = array<i64: 1, 64, 128>}]} {
    %c0_i32 = arith.constant 0 : i32
    %0 = arith.cmpi eq, %arg2, %c0_i32 : i32
    %1 = arith.extui %0 : i1 to i32
    %c0_i32_0 = arith.constant 0 : i32
    %2 = arith.cmpi ne, %1, %c0_i32_0 : i32
    scf.if %2 {
      %cst_30 = arith.constant 0.000000e+00 : f32
      %51 = vector.broadcast %cst_30 : f32 to vector<64x128xf32>
      %c0_31 = arith.constant 0 : index
      %c0_32 = arith.constant 0 : index
      %52 = vector.load %arg8[%c0_31, %c0_32] : memref<64x128xf32, #tpu.memory_space<vmem>>, vector<64x128xf32>
      tpu.vector_store %arg8[%c0_31, %c0_32], %51 {strides = array<i32>} : memref<64x128xf32, #tpu.memory_space<vmem>>, vector<64x128xf32>,
    } else {
    }
    %c0 = arith.constant 0 : index
    %c0_1 = arith.constant 0 : index
    %3 = vector.load %arg4[%c0, %c0_1] : memref<1x4xf32, #tpu.memory_space<vmem>>, vector<1x4xf32>
    %c0_2 = arith.constant 0 : index
    %c0_3 = arith.constant 0 : index
    %4 = vector.load %arg5[%c0_2, %c0_3] : memref<1x4xf32, #tpu.memory_space<vmem>>, vector<1x4xf32>
    %c0_4 = arith.constant 0 : index
    %c0_5 = arith.constant 0 : index
    %c0_6 = arith.constant 0 : index
    %c0_7 = arith.constant 0 : index
    %5 = vector.load %arg3[%c0_4, %c0_5, %c0_6, %c0_7] : memref<1x4x64x4xf32, #tpu.memory_space<vmem>>, vector<1x1x64x4xf32>
    %6 = vector.shape_cast %5 : vector<1x1x64x4xf32> to vector<64x4xf32>
    %7 = vector.broadcast %3 : vector<1x4xf32> to vector<64x4xf32>
    %8 = arith.mulf %6, %7 : vector<64x4xf32>
    %9 = vector.broadcast %4 : vector<1x4xf32> to vector<64x4xf32>
    %10 = arith.addf %8, %9 : vector<64x4xf32>
    %cst = arith.constant 0.000000e+00 : f32
    %11 = vector.broadcast %cst : f32 to vector<64x4xf32>
    %12 = arith.maximumf %10, %11 : vector<64x4xf32>
    %c0_8 = arith.constant 0 : index
    %c1 = arith.constant 1 : index
    %c0_9 = arith.constant 0 : index
    %c0_10 = arith.constant 0 : index
    %13 = vector.load %arg3[%c0_8, %c1, %c0_9, %c0_10] : memref<1x4x64x4xf32, #tpu.memory_space<vmem>>, vector<1x1x64x4xf32>
    %14 = vector.shape_cast %13 : vector<1x1x64x4xf32> to vector<64x4xf32>
    %15 = vector.broadcast %3 : vector<1x4xf32> to vector<64x4xf32>
    %16 = arith.mulf %14, %15 : vector<64x4xf32>
    %17 = vector.broadcast %4 : vector<1x4xf32> to vector<64x4xf32>
    %18 = arith.addf %16, %17 : vector<64x4xf32>
    %cst_11 = arith.constant 0.000000e+00 : f32
    %19 = vector.broadcast %cst_11 : f32 to vector<64x4xf32>
    %20 = arith.maximumf %18, %19 : vector<64x4xf32>
    %21 = arith.addf %12, %20 : vector<64x4xf32>
    %c0_12 = arith.constant 0 : index
    %c2 = arith.constant 2 : index
    %c0_13 = arith.constant 0 : index
    %c0_14 = arith.constant 0 : index
    %22 = vector.load %arg3[%c0_12, %c2, %c0_13, %c0_14] : memref<1x4x64x4xf32, #tpu.memory_space<vmem>>, vector<1x1x64x4xf32>
    %23 = vector.shape_cast %22 : vector<1x1x64x4xf32> to vector<64x4xf32>
    %24 = vector.broadcast %3 : vector<1x4xf32> to vector<64x4xf32>
    %25 = arith.mulf %23, %24 : vector<64x4xf32>
    %26 = vector.broadcast %4 : vector<1x4xf32> to vector<64x4xf32>
    %27 = arith.addf %25, %26 : vector<64x4xf32>
    %cst_15 = arith.constant 0.000000e+00 : f32
    %28 = vector.broadcast %cst_15 : f32 to vector<64x4xf32>
    %29 = arith.maximumf %27, %28 : vector<64x4xf32>
    %30 = arith.addf %21, %29 : vector<64x4xf32>
    %c0_16 = arith.constant 0 : index
    %c3 = arith.constant 3 : index
    %c0_17 = arith.constant 0 : index
    %c0_18 = arith.constant 0 : index
    %31 = vector.load %arg3[%c0_16, %c3, %c0_17, %c0_18] : memref<1x4x64x4xf32, #tpu.memory_space<vmem>>, vector<1x1x64x4xf32>
    %32 = vector.shape_cast %31 : vector<1x1x64x4xf32> to vector<64x4xf32>
    %33 = vector.broadcast %3 : vector<1x4xf32> to vector<64x4xf32>
    %34 = arith.mulf %32, %33 : vector<64x4xf32>
    %35 = vector.broadcast %4 : vector<1x4xf32> to vector<64x4xf32>
    %36 = arith.addf %34, %35 : vector<64x4xf32>
    %cst_19 = arith.constant 0.000000e+00 : f32
    %37 = vector.broadcast %cst_19 : f32 to vector<64x4xf32>
    %38 = arith.maximumf %36, %37 : vector<64x4xf32>
    %39 = arith.addf %30, %38 : vector<64x4xf32>
    %cst_20 = arith.constant 2.500000e-01 : f32
    %40 = vector.broadcast %cst_20 : f32 to vector<64x4xf32>
    %41 = arith.mulf %39, %40 : vector<64x4xf32>
    %c0_21 = arith.constant 0 : index
    %c0_22 = arith.constant 0 : index
    %42 = vector.load %arg8[%c0_21, %c0_22] : memref<64x128xf32, #tpu.memory_space<vmem>>, vector<64x128xf32>
    %43 = arith.truncf %41 : vector<64x4xf32> to vector<64x4xbf16>
    %c0_23 = arith.constant 0 : index
    %c0_24 = arith.constant 0 : index
    %44 = vector.load %arg6[%c0_23, %c0_24] : memref<4x128xbf16, #tpu.memory_space<vmem>>, vector<4x128xbf16>
    %cst_25 = arith.constant dense<0.000000e+00> : vector<64x128xf32>
    %45 = tpu.matmul %43, %44, %cst_25 {dimension_numbers = #tpu.dot_dimension_numbers<[1], [0], [0], [1], [0, 0, 1, 1], [], []>} : vector<64x4xbf16>, vector<4x128xbf16>, vector<64x128xf32> -> vector<64x128xf32>
    %46 = arith.addf %42, %45 : vector<64x128xf32>
    %c0_26 = arith.constant 0 : index
    %c0_27 = arith.constant 0 : index
    %47 = vector.load %arg8[%c0_26, %c0_27] : memref<64x128xf32, #tpu.memory_space<vmem>>, vector<64x128xf32>
    tpu.vector_store %arg8[%c0_26, %c0_27], %46 {strides = array<i32>} : memref<64x128xf32, #tpu.memory_space<vmem>>, vector<64x128xf32>,
    %c0_i32_28 = arith.constant 0 : i32
    %48 = arith.cmpi eq, %arg2, %c0_i32_28 : i32
    %49 = arith.extui %48 : i1 to i32
    %c0_i32_29 = arith.constant 0 : i32
    %50 = arith.cmpi ne, %49, %c0_i32_29 : i32
    scf.if %50 {
      %c0_30 = arith.constant 0 : index
      %c0_31 = arith.constant 0 : index
      %51 = vector.load %arg8[%c0_30, %c0_31] : memref<64x128xf32, #tpu.memory_space<vmem>>, vector<64x128xf32>
      %c0_32 = arith.constant 0 : index
      %c0_33 = arith.constant 0 : index
      %c0_34 = arith.constant 0 : index
      %52 = vector.load %arg7[%c0_32, %c0_33, %c0_34] : memref<1x64x128xf32, #tpu.memory_space<vmem>>, vector<1x64x128xf32>
      %53 = vector.shape_cast %52 : vector<1x64x128xf32> to vector<64x128xf32>
      %54 = vector.shape_cast %51 : vector<64x128xf32> to vector<1x64x128xf32>
      tpu.vector_store %arg7[%c0_32, %c0_33, %c0_34], %54 {strides = array<i32>} : memref<1x64x128xf32, #tpu.memory_space<vmem>>, vector<1x64x128xf32>,
    } else {
    }
    return
  }
  func.func @transform_0(%arg0: i32, %arg1: i32, %arg2: i32) -> (i32, i32, i32, i32) {
    %c0_i32 = arith.constant 0 : i32
    %c0_i32_0 = arith.constant 0 : i32
    return %arg0, %c0_i32, %arg1, %arg2 : i32, i32, i32, i32
  }
  func.func @transform_1(%arg0: i32, %arg1: i32, %arg2: i32) -> (i32, i32) {
    %c0_i32 = arith.constant 0 : i32
    %c0_i32_0 = arith.constant 0 : i32
    return %c0_i32, %arg2 : i32, i32
  }
  func.func @transform_2(%arg0: i32, %arg1: i32, %arg2: i32) -> (i32, i32) {
    %c0_i32 = arith.constant 0 : i32
    %c0_i32_0 = arith.constant 0 : i32
    return %c0_i32, %arg2 : i32, i32
  }
  func.func @transform_3(%arg0: i32, %arg1: i32, %arg2: i32) -> (i32, i32) {
    %c0_i32 = arith.constant 0 : i32
    %c0_i32_0 = arith.constant 0 : i32
    return %arg2, %c0_i32 : i32, i32
  }
  func.func @transform_4(%arg0: i32, %arg1: i32, %arg2: i32) -> (i32, i32, i32) {
    %c0_i32 = arith.constant 0 : i32
    %c0_i32_0 = arith.constant 0 : i32
    return %arg0, %arg1, %c0_i32 : i32, i32, i32
  }
}

</mosaic_0001>

<bundles_post_ra>
// kernel: tpu_custom_call.1
= control target key start
LH: loop header
LB: loop body
LE: loop exit
PB: predicated region body
PF: predicated region fallthrough
CT: control target
= control target key end

     0   :  { %9 = vsyncpa [#allocation4], 0  ;;  %s1137_s0 = inlined_call_operand.vmem [shape: f32[2,4,64,4], index: 0, kind: input, shape index: {}]   ;;  %s1138_s1 = inlined_call_operand.vmem [shape: f32[1,4], index: 1, kind: input, shape index: {}]   ;;  %s1139_s2 = inlined_call_operand.vmem [shape: f32[1,4], index: 2, kind: input, shape index: {}]   ;;  %s1140_s3 = inlined_call_operand.vmem [shape: bf16[4,128], index: 3, kind: input, shape index: {}]   ;;  %s1141_s4 = inlined_call_operand.hbm [shape: f32[2,64,128], index: 4, kind: output, shape index: {}]  }
   0x1   :  { %11 = vsyncpa [#allocation4 + $0x1], 0  ;;  %s925_s15 = smov 0   ;;  %s927_s16 = smov 0  }
   0x2   :  { %s929_s17 = smov 0   ;;  %s931_s18 = smov 0  }
   0x3   :  { %s933_s19 = smov 0   ;;  %s935_s20 = smov 0  }
   0x4 LB: > { %s710_s21 = sadd.s32 4294967295, %s896_s20   ;;  %s711_s22 = sadd.s32 4294967294, %s896_s20   ;;  %s896_s20 = sphi %s935_s20, %s17_s20   ;;  %s892_s19 = sphi %s933_s19, %s1148_s19   ;;  %s888_s18 = sphi %s931_s18, %s1147_s18   ;;  %s884_s17 = sphi %s929_s17, %s1146_s17   ;;  %s880_s16 = sphi %s927_s16, %s1145_s16   ;;  %s876_s15 = sphi %s925_s15, %s1144_s15  }
   0x5   : > { %s36_s23 = sadd.s32 1, %s892_s19  ;;  %s153_s24 = sadd.s32 1, %s884_s17 }
   0x6   : > { %p38_p0 = scmp.ge.s32.totalorder %s36_s23, 2  ;;  %p163_p1 = scmp.ne.s32.totalorder %s884_s17, %s880_s16 }
   0x7   : > { %p164_p2 = scmp.eq.s32.totalorder %s710_s21, 1  ;;  %p169_p3 = scmp.ne.s32.totalorder %s880_s16, %s876_s15 }
   0x8   : > { %s1150_s23 = smov (%p38_p0, %s36_s23), 0  ;;  %p170_p5 = scmp.eq.s32.totalorder %s711_s22, 1 }
   0x9   : > { %p965_p4 = por %p164_p2, %p163_p1  ;;  %s148_s26 = ssub.s32 %s892_s19, %s1150_s23 }
   0xa   : > { %p717_p6 = scmp.ge.s32.totalorder %s896_s20, 1  ;;  %p151_p7 = scmp.eq.s32.totalorder %s148_s26, 0 }
   0xb   : > { %p972_p8 = por %p170_p5, %p169_p3  ;;  %p223_p9 = scmp.lt.s32.totalorder %s896_s20, 3 }
   0xc   : > { %s978_s28 = scalar_select %p151_p7, %s884_s17, %s153_s24  }
   0xd   : > { %p224_p10 = pnand %p717_p6, %p223_p9 }
   0xe   : > { %p267_p11 = scmp.lt.s32.totalorder (!%p224_p10), %s888_s18, 1  ;;  %s263_s14 = sand.u32 (!%p224_p10), 1, %s880_s16  }
   0xf   : > { %227 = sbr.rel (%p224_p10) target bundleno = 210 (0xd2), region = 36  ;;  %s718_s21 = sshll.u32 (!%p224_p10), %s263_s14, 6 }
  0x10   : > { %s265_s22 = scalar_lea.vmem (!%p224_p10), [#allocation3], %s718_s21  ;;  %s755_s24 = sshll.u32 (!%p224_p10), %s888_s18, 6 }
  0x11   : > { %s582_s30 = scalar_lea.hbm (!%p224_p10), %s1141_s4, %s755_s24  ;;  %s569_s7 = scalar_lea.sflag (!%p224_p10), [#allocation4], %s263_s14 }
  0x12   : > { %s585_s6 = sshll.u32 (!%p224_p10), %s582_s30, 4  ;;  %s586_s6 = int_to_ptr.hbm [resolvable:$true] %s585_s6 }
  0x14   : > { %v486_v0 = vld [vmem:[%s1140_s3] sm:$0x3]  ;;  %vm500_vm0 = vcmask 1041408   ;;  %s268_s5 = scalar_select %p267_p11, %s888_s18, 1  ;;  %vm487_vm1 = vcmask 31744  }
  0x15   : > { %v502_v1 = vsel %vm500_vm0, %v486_v0, 0  ;;  %v988_v2 = vld [vmem:[%s1138_s1] ss:$0 sm:$0xff] }
  0x16   : > { %511 = vmatpush.bf16.msra.mxu0 %v502_v1  ;;  %756 = vmatpush.bf16.msra.mxu1 %v502_v1  ;;  %s754_s8 = sshll.u32 %s268_s5, 8  ;;  %v998_v3 = vld [vmem:[%s1139_s2] ss:$0 sm:$0xff]  ;;  %s583_s5 = sshll.u32 %s265_s22, 4  ;;  %s584_s5 = int_to_ptr.vmem [resolvable:$true] %s583_s5 }
  0x17   : > { %757 = vmatpush.bf16.msra.mxu2 %v502_v1  ;;  %758 = vmatpush.bf16.msra.mxu3 %v502_v1  ;;  %s993_s11 = scalar_lea.vmem %s1137_s0, %s754_s8  ;;  %s832_s8 = sshra.s32 %s586_s6, 4  ;;  %s833_s8 = int_to_ptr.hbm [resolvable:$true] %s832_s8 }
  0x18   : > { %v305_v4 = vld [vmem:[%s993_s11] sm:$0xff]  ;;  %v306_v5 = vld [vmem:[%s993_s11 + $0x8] sm:$0xff]  ;;  %v307_v26 = vld [vmem:[%s993_s11 + $0x10] sm:$0xff]  ;;  %s834_s9 = scalar_lea.hbm %s833_s8, 64  ;;  %p839_p1 = scmp.lt.s32.totalorder %s833_s8, %s1141_s4 }
  0x19   : > { %v721_v6 = vld [vmem:[%s993_s11 + $0x40] sm:$0xff]  ;;  %v316_v7 = vmul.f32 %v988_v2, %v305_v4  ;;  %v317_v8 = vmul.f32 %v988_v2, %v306_v5  ;;  %v722_v9 = vld [vmem:[%s993_s11 + $0x48] sm:$0xff]  ;;  %v308_v27 = vld [vmem:[%s993_s11 + $0x18] sm:$0xff]  ;;  %v318_v41 = vmul.f32 %v988_v2, %v307_v26  ;;  %p835_p12 = scmp.ne.s32.totalorder %s833_s8, %s834_s9 }
  0x1a   : > { %v352_v10 = vmul.f32 %v988_v2, %v721_v6  ;;  %v729_v11 = vld [vmem:[%s993_s11 + $0x80] sm:$0xff]  ;;  %v730_v12 = vld [vmem:[%s993_s11 + $0x88] sm:$0xff]  ;;  %v353_v13 = vmul.f32 %v988_v2, %v722_v9  ;;  %v723_v32 = vld [vmem:[%s993_s11 + $0x50] sm:$0xff]  ;;  %v319_v42 = vmul.f32 %v988_v2, %v308_v27 }
  0x1b   : > { %v393_v14 = vmul.f32 %v988_v2, %v729_v11  ;;  %v394_v15 = vmul.f32 %v988_v2, %v730_v12  ;;  %v737_v16 = vld [vmem:[%s993_s11 + $0xc0] sm:$0xff]  ;;  %v738_v17 = vld [vmem:[%s993_s11 + $0xc8] sm:$0xff]  ;;  %v327_v18 = vadd.f32 %v998_v3, %v316_v7  ;;  %v328_v19 = vadd.f32 %v998_v3, %v317_v8  ;;  %v724_v33 = vld [vmem:[%s993_s11 + $0x58] sm:$0xff]  ;;  %p836_p13 = pnand %p835_p12, %p965_p4 }
  0x1c   : > { %v360_v20 = vadd.f32 %v998_v3, %v352_v10  ;;  %v434_v21 = vmul.f32 %v988_v2, %v737_v16  ;;  %v361_v22 = vadd.f32 %v998_v3, %v353_v13  ;;  %v435_v25 = vmul.f32 %v988_v2, %v738_v17  ;;  %v731_v38 = vld [vmem:[%s993_s11 + $0x90] sm:$0xff]  ;;  %v732_v43 = vld [vmem:[%s993_s11 + $0x98] sm:$0xff]  ;;  %v309_v4 = vld [vmem:[%s993_s11 + $0x20] sm:$0xff] }
  0x1d   : > { %v401_v23 = vadd.f32 %v998_v3, %v393_v14  ;;  %v402_v24 = vadd.f32 %v998_v3, %v394_v15  ;;  %v335_v28 = vmax.f32 %v327_v18, 0.0  ;;  %v336_v29 = vmax.f32 %v328_v19, 0.0  ;;  %v739_v56 = vld [vmem:[%s993_s11 + $0xd0] sm:$0xff]  ;;  %v740_v57 = vld [vmem:[%s993_s11 + $0xd8] sm:$0xff]  ;;  %v310_v5 = vld [vmem:[%s993_s11 + $0x28] sm:$0xff]  ;;  %p837_p0 = pneg %p836_p13 }
  0x1e   : > { %v368_v30 = vmax.f32 %v360_v20, 0.0  ;;  %v442_v31 = vadd.f32 %v998_v3, %v434_v21  ;;  %v369_v34 = vmax.f32 %v361_v22, 0.0  ;;  %v443_v37 = vadd.f32 %v998_v3, %v435_v25  ;;  %v725_v10 = vld [vmem:[%s993_s11 + $0x60] sm:$0xff]  ;;  %v726_v19 = vld [vmem:[%s993_s11 + $0x68] sm:$0xff] }
  0x1f   : > { %v409_v35 = vmax.f32 %v401_v23, 0.0  ;;  %v410_v36 = vmax.f32 %v402_v24, 0.0  ;;  %v354_v46 = vmul.f32 %v988_v2, %v723_v32  ;;  %v355_v47 = vmul.f32 %v988_v2, %v724_v33  ;;  %v733_v20 = vld [vmem:[%s993_s11 + $0xa0] sm:$0xff]  ;;  %v734_v21 = vld [vmem:[%s993_s11 + $0xa8] sm:$0xff] }
  0x20   : > { %v376_v39 = vadd.f32 %v368_v30, %v335_v28  ;;  %v450_v40 = vmax.f32 %v442_v31, 0.0  ;;  %v377_v44 = vadd.f32 %v369_v34, %v336_v29  ;;  %v451_v45 = vmax.f32 %v443_v37, 0.0  ;;  %v741_v34 = vld [vmem:[%s993_s11 + $0xe0] sm:$0xff] }
  0x21   : > { %v329_v49 = vadd.f32 %v998_v3, %v318_v41  ;;  %v330_v50 = vadd.f32 %v998_v3, %v319_v42  ;;  %v395_v51 = vmul.f32 %v988_v2, %v731_v38  ;;  %v362_v53 = vadd.f32 %v998_v3, %v354_v46 }
  0x22   : > { %v417_v48 = vadd.f32 %v409_v35, %v376_v39  ;;  %v418_v52 = vadd.f32 %v410_v36, %v377_v44  ;;  %v363_v54 = vadd.f32 %v998_v3, %v355_v47  ;;  %v396_v55 = vmul.f32 %v988_v2, %v732_v43  ;;  %v742_v35 = vld [vmem:[%s993_s11 + $0xe8] sm:$0xff]  ;;  %v311_v44 = vld [vmem:[%s993_s11 + $0x30] sm:$0xff] }
  0x23   : > { %v337_v59 = vmax.f32 %v329_v49, 0.0  ;;  %v338_v60 = vmax.f32 %v330_v50, 0.0  ;;  %v403_v61 = vadd.f32 %v998_v3, %v395_v51  ;;  %v370_v63 = vmax.f32 %v362_v53, 0.0  ;;  %v312_v49 = vld [vmem:[%s993_s11 + $0x38] sm:$0xff]  ;;  %v727_v50 = vld [vmem:[%s993_s11 + $0x70] sm:$0xff] }
  0x24   : > { %v458_v58 = vadd.f32 %v450_v40, %v417_v48  ;;  %v459_v62 = vadd.f32 %v451_v45, %v418_v52  ;;  %v371_v0 = vmax.f32 %v363_v54, 0.0  ;;  %v404_v1 = vadd.f32 %v998_v3, %v396_v55  ;;  %v728_v55 = vld [vmem:[%s993_s11 + $0x78] sm:$0xff] }
  0x25   : > { %v411_v7 = vmax.f32 %v403_v61, 0.0  ;;  %v436_v8 = vmul.f32 %v988_v2, %v739_v56  ;;  %v437_v9 = vmul.f32 %v988_v2, %v740_v57  ;;  %v378_v12 = vadd.f32 %v370_v63, %v337_v59 }
  0x26   : > { %v466_v6 = vmul.f32 0.25, %v458_v58  ;;  %v467_v11 = vmul.f32 0.25, %v459_v62  ;;  %v379_v13 = vadd.f32 %v371_v0, %v338_v60  ;;  %v412_v14 = vmax.f32 %v404_v1, 0.0  ;;  %v735_v60 = vld [vmem:[%s993_s11 + $0xb0] sm:$0xff]  ;;  %v736_v1 = vld [vmem:[%s993_s11 + $0xb8] sm:$0xff] }
  0x27   : > { %v444_v15 = vadd.f32 %v998_v3, %v436_v8  ;;  %v445_v16 = vadd.f32 %v998_v3, %v437_v9  ;;  %v320_v17 = vmul.f32 %v988_v2, %v309_v4  ;;  %v321_v18 = vmul.f32 %v988_v2, %v310_v5 }
  0x28   : > { %v482_v22 = vpack.c.bf16 %v467_v11, %v466_v6  ;;  %v419_v23 = vadd.f32 %v411_v7, %v378_v12  ;;  %v420_v24 = vadd.f32 %v412_v14, %v379_v13  ;;  %v356_v25 = vmul.f32 %v988_v2, %v725_v10  ;;  %v743_v12 = vld [vmem:[%s993_s11 + $0xf0] sm:$0xff] }
  0x29   : > { %v452_v26 = vmax.f32 %v444_v15, 0.0  ;;  %v453_v27 = vmax.f32 %v445_v16, 0.0  ;;  %v331_v28 = vadd.f32 %v998_v3, %v320_v17  ;;  %v332_v29 = vadd.f32 %v998_v3, %v321_v18  ;;  %v744_v17 = vld [vmem:[%s993_s11 + $0xf8] sm:$0xff]  ;;  %s838_s11 = scalar_lea.hbm %s1141_s4, 128 }
  0x2a   : > { %745 = vmatmul.msk.bf16.vlgmr.msra.gmra.mxu0 %vm487_vm1, %v482_v22  ;;  %v357_v30 = vmul.f32 %v988_v2, %v726_v19  ;;  %v364_v31 = vadd.f32 %v998_v3, %v356_v25  ;;  %v397_v32 = vmul.f32 %v988_v2, %v733_v20  ;;  %v398_v33 = vmul.f32 %v988_v2, %v734_v21  ;;  %p840_p2 = scmp.lt.s32.totalorder %s838_s11, %s834_s9 }
  0x2b   : > { %v460_v36 = vadd.f32 %v452_v26, %v419_v23  ;;  %v461_v37 = vadd.f32 %v453_v27, %v420_v24  ;;  %v339_v38 = vmax.f32 %v331_v28, 0.0  ;;  %v340_v39 = vmax.f32 %v332_v29, 0.0 }
  0x2c   : > { %v365_v40 = vadd.f32 %v998_v3, %v357_v30  ;;  %v372_v41 = vmax.f32 %v364_v31, 0.0  ;;  %v405_v42 = vadd.f32 %v998_v3, %v397_v32  ;;  %v406_v43 = vadd.f32 %v998_v3, %v398_v33  ;;  %p841_p3 = por %p840_p2, %p839_p1 }
  0x2d   : > { %v468_v45 = vmul.f32 0.25, %v460_v36  ;;  %v469_v46 = vmul.f32 0.25, %v461_v37  ;;  %v438_v47 = vmul.f32 %v988_v2, %v741_v34  ;;  %v439_v48 = vmul.f32 %v988_v2, %v742_v35 }
  0x2e   : > { %v373_v51 = vmax.f32 %v365_v40, 0.0  ;;  %v380_v52 = vadd.f32 %v372_v41, %v339_v38  ;;  %v413_v53 = vmax.f32 %v405_v42, 0.0  ;;  %v414_v54 = vmax.f32 %v406_v43, 0.0  ;;  %p842_p5 = pnand %p841_p3, %p837_p0 }
  0x2f   : > { %v483_v56 = vpack.c.bf16 %v469_v46, %v468_v45  ;;  %v446_v57 = vadd.f32 %v998_v3, %v438_v47  ;;  %v447_v58 = vadd.f32 %v998_v3, %v439_v48  ;;  %v322_v59 = vmul.f32 %v988_v2, %v311_v44 }
  0x30   : > { %v381_v61 = vadd.f32 %v373_v51, %v340_v39  ;;  %v421_v62 = vadd.f32 %v413_v53, %v380_v52  ;;  %v323_v63 = vmul.f32 %v988_v2, %v312_v49  ;;  %v358_v0 = vmul.f32 %v988_v2, %v727_v50 }
  0x31   : > { %746 = vmatmul.msk.bf16.vlgmr.msra.gmra.mxu1 %vm487_vm1, %v483_v56  ;;  %v454_v4 = vmax.f32 %v446_v57, 0.0  ;;  %v455_v5 = vmax.f32 %v447_v58, 0.0  ;;  %v333_v6 = vadd.f32 %v998_v3, %v322_v59  ;;  %v359_v7 = vmul.f32 %v988_v2, %v728_v55 }
  0x32   : > { %v422_v8 = vadd.f32 %v414_v54, %v381_v61  ;;  %v334_v9 = vadd.f32 %v998_v3, %v323_v63  ;;  %v366_v10 = vadd.f32 %v998_v3, %v358_v0  ;;  %v399_v11 = vmul.f32 %v988_v2, %v735_v60 }
  0x33   : > { %v462_v13 = vadd.f32 %v454_v4, %v421_v62  ;;  %v341_v14 = vmax.f32 %v333_v6, 0.0  ;;  %v367_v15 = vadd.f32 %v998_v3, %v359_v7  ;;  %v400_v16 = vmul.f32 %v988_v2, %v736_v1 }
  0x34   : > { %v463_v18 = vadd.f32 %v455_v5, %v422_v8  ;;  %v342_v19 = vmax.f32 %v334_v9, 0.0  ;;  %v374_v20 = vmax.f32 %v366_v10, 0.0  ;;  %v407_v21 = vadd.f32 %v998_v3, %v399_v11 }
  0x35   : > { %v470_v22 = vmul.f32 0.25, %v462_v13  ;;  %v375_v23 = vmax.f32 %v367_v15, 0.0  ;;  %v408_v24 = vadd.f32 %v998_v3, %v400_v16  ;;  %v440_v25 = vmul.f32 %v988_v2, %v743_v12 }
  0x36   : > { %v471_v26 = vmul.f32 0.25, %v463_v18  ;;  %v382_v27 = vadd.f32 %v374_v20, %v341_v14  ;;  %v415_v28 = vmax.f32 %v407_v21, 0.0  ;;  %v441_v29 = vmul.f32 %v988_v2, %v744_v17 }
  0x37   : > { %v383_v30 = vadd.f32 %v375_v23, %v342_v19  ;;  %v416_v31 = vmax.f32 %v408_v24, 0.0  ;;  %v448_v32 = vadd.f32 %v998_v3, %v440_v25 }
  0x38   : > { %v484_v33 = vpack.c.bf16 %v471_v26, %v470_v22  ;;  %v423_v34 = vadd.f32 %v415_v28, %v382_v27  ;;  %v449_v35 = vadd.f32 %v998_v3, %v441_v29 }
  0x39   : > { %v424_v36 = vadd.f32 %v416_v31, %v383_v30  ;;  %v456_v37 = vmax.f32 %v448_v32, 0.0 }
  0x3a   : > { %747 = vmatmul.msk.bf16.vlgmr.msra.gmra.mxu2 %vm487_vm1, %v484_v33  ;;  %v457_v38 = vmax.f32 %v449_v35, 0.0 }
  0x3b   : > { %v464_v39 = vadd.f32 %v456_v37, %v423_v34 }
  0x3c   : > { %v465_v40 = vadd.f32 %v457_v38, %v424_v36 }
  0x3d   : > { %v472_v41 = vmul.f32 0.25, %v464_v39 }
  0x3e   : > { %v473_v42 = vmul.f32 0.25, %v465_v40 }
  0x40   : > { %v485_v2 = vpack.c.bf16 %v473_v42, %v472_v41 }
  0x42   : > { %748 = vmatmul.msk.bf16.vlgmr.msra.gmra.mxu3 %vm487_vm1, %v485_v2 }
  0xa7   : > { %v513_v43 = vpop.f32.mrf.mxu0 }
  0xa8   : > { %560 = vst [vmem:[%s265_s22] sm:$0xff] %v513_v43 }
  0xae   : > { %v518_v44 = vpop.f32.mrf.mxu1 }
  0xaf   : > { %562 = vst [vmem:[%s265_s22 + $0x10] sm:$0xff] %v518_v44  ;;  %v515_v3 = vpop.f32.mrf.mxu0 }
  0xb0   : > { %561 = vst [vmem:[%s265_s22 + $0x8] sm:$0xff] %v515_v3 }
  0xb6   : > { %v520_v45 = vpop.f32.mrf.mxu1 }
  0xb7   : > { %563 = vst [vmem:[%s265_s22 + $0x18] sm:$0xff] %v520_v45 }
  0xbd   : > { %v523_v46 = vpop.f32.mrf.mxu2 }
  0xbe   : > { %564 = vst [vmem:[%s265_s22 + $0x20] sm:$0xff] %v523_v46 }
  0xc5   : > { %v528_v47 = vpop.f32.mrf.mxu3  ;;  %v525_v48 = vpop.f32.mrf.mxu2 }
  0xc6   : > { %566 = vst [vmem:[%s265_s22 + $0x30] sm:$0xff] %v528_v47 }
  0xc7   : > { %565 = vst [vmem:[%s265_s22 + $0x28] sm:$0xff] %v525_v48 }
  0xcd   : > { %v530_v49 = vpop.f32.mrf.mxu3 }
  0xce   : > { %567 = vst [vmem:[%s265_s22 + $0x38] sm:$0xff] %v530_v49 }
  0xcf   : > { %845 = shalt.err (!%p842_p5)
}
  0xd0   : > { %s898_s14 = smov 128   ;;  %s899_s21 = smov 8  }
  0xd1   : > { %759 = dma.vmem_to_hbm [thread:$0]  (%p965_p4), %s584_s5, 1024, %s586_s6, %s569_s7, %s898_s14, %s898_s14, %s899_s21  }
  0xd2 PF: > { %p765_p6 = scmp.ge.s32.totalorder %s896_s20, 2  ;;  %s600_s22 = sand.u32 1, %s876_s15  }
  0xd3   : > { %s601_s24 = scalar_lea.sflag [#allocation4], %s600_s22 }
  0xd4   : > { %p762_p7 = pnand %p765_p6, %p972_p8 }
  0xd6   : > { %p763_p9 = pneg %p762_p7 }
  0xd8   : > { %871 = dma.done.wait (%p763_p9), %s601_s24, 1024  }
  0xd9   : > { %873 = vsyncadd (%p763_p9), %s601_s24, 4294966272  ;;  %s17_s20 = sadd.s32 1, %s896_s20   ;;  %s1144_s15 = smov %s880_s16 }
  0xda   : > { %p14_p10 = scmp.ge.s32.totalorder %s17_s20, 4   ;;  %s1145_s16 = smov %s884_s17 }
  0xdb   : > { %s1146_s17 = smov %s978_s28  ;;  %s1147_s18 = smov %s892_s19 }
  0xdc   : > { %s1148_s19 = smov %s1150_s23  ;;  %16 = sbr.rel (!%p14_p10) target bundleno = 4 (0x4), region = 91 }
  0xe1   :  { %607 = vsyncpa [#allocation4], 1 }
  0xe2   :  { %609 = vsyncpa [#allocation4 + $0x1], 1 }

</bundles_post_ra>
